<compile_context>
chip_gen: v5e
topology: v5e:2x2
jax: 0.10.0
libtpu: 0.0.40
codegen_flags: <defaults>
</compile_context>

<pallas_src>
import functools

import jax
import jax.numpy as jnp
from jax.experimental import pallas as pl
from jax.experimental.pallas import tpu as pltpu

EPS = 1e-5

_PARALLEL_1D = pltpu.CompilerParams(dimension_semantics=("parallel",))


def _round_up(v, m):
    return ((v + m - 1) // m) * m


def _pad2(a, rows, cols):
    return jnp.pad(a, ((0, rows - a.shape[0]), (0, cols - a.shape[1])))


# ---------------------------------------------------------------------------
# Pallas kernels
# ---------------------------------------------------------------------------
def matmul_stats_kernel(p_ref, w_ref, y_ref, stats_ref):
    """y = patches @ W (MXU, f32 accum) + per-tile partial sum/sumsq per channel."""
    y = jnp.dot(p_ref[...], w_ref[...], preferred_element_type=jnp.float32)
    y_ref[...] = y
    s = jnp.sum(y, axis=0, keepdims=True)        # (1, C_pad)
    ss = jnp.sum(y * y, axis=0, keepdims=True)   # (1, C_pad)
    c = stats_ref.shape[-1]
    row = jax.lax.broadcasted_iota(jnp.int32, (8, c), 0)
    # row 0 = partial sum, row 1 = partial sum of squares, rest = 0
    stats_ref[...] = jnp.where(row == 0, s, jnp.where(row == 1, ss, 0.0))


def scale_shift_relu_kernel(y_ref, sc_ref, sh_ref, o_ref):
    """o = relu(y * scale + shift)  -- folded BatchNorm + ReLU."""
    o_ref[...] = jnp.maximum(y_ref[...] * sc_ref[...] + sh_ref[...], 0.0
                             ).astype(o_ref.dtype)


def residual_merge_kernel(y2_ref, sc2_ref, sh2_ref, yd_ref, scd_ref, shd_ref, o_ref):
    """o = relu(bn2(y2) + bn_d(yd))  -- both BNs folded to scale/shift."""
    main = y2_ref[...] * sc2_ref[...] + sh2_ref[...]
    iden = yd_ref[...] * scd_ref[...] + shd_ref[...]
    o_ref[...] = jnp.maximum(main + iden, 0.0).astype(o_ref.dtype)


# ---------------------------------------------------------------------------
# pallas_call wrappers
# ---------------------------------------------------------------------------
def _conv_matmul_stats(p, wmat, block_m):
    """Tiled matmul over M with fused per-tile BN-stat partials."""
    m_pad, k_pad = p.shape
    c_pad = wmat.shape[1]
    nt = m_pad // block_m
    cost = pl.CostEstimate(
        flops=2 * m_pad * k_pad * c_pad,
        transcendentals=0,
        bytes_accessed=int(p.size) * p.dtype.itemsize
        + int(wmat.size) * wmat.dtype.itemsize
        + m_pad * c_pad * 4 + nt * 8 * c_pad * 4,
    )
    y, partial = pl.pallas_call(
        matmul_stats_kernel,
        out_shape=(jax.ShapeDtypeStruct((m_pad, c_pad), jnp.float32),
                   jax.ShapeDtypeStruct((8 * nt, c_pad), jnp.float32)),
        grid=(nt,),
        in_specs=[pl.BlockSpec((block_m, k_pad), lambda i: (i, 0)),
                  pl.BlockSpec((k_pad, c_pad), lambda i: (0, 0))],   # weight resident
        out_specs=(pl.BlockSpec((block_m, c_pad), lambda i: (i, 0)),
                   pl.BlockSpec((8, c_pad), lambda i: (i, 0))),
        compiler_params=_PARALLEL_1D,
        cost_estimate=cost,
    )(p, wmat)
    stats = jnp.sum(partial.reshape(nt, 8, c_pad), axis=0)   # (8, C_pad): rows 0/1 used
    return y, stats


def _scale_shift_relu(y, scale, shift, block_m, out_dtype):
    m_pad, c_pad = y.shape
    nt = m_pad // block_m
    row_spec = pl.BlockSpec((block_m, c_pad), lambda i: (i, 0))
    vec_spec = pl.BlockSpec((1, c_pad), lambda i: (0, 0))
    return pl.pallas_call(
        scale_shift_relu_kernel,
        out_shape=jax.ShapeDtypeStruct((m_pad, c_pad), out_dtype),
        grid=(nt,),
        in_specs=[row_spec, vec_spec, vec_spec],
        out_specs=row_spec,
        compiler_params=_PARALLEL_1D,
    )(y, scale, shift)


def _residual_merge(y2, sc2, sh2, yd, scd, shd, block_m):
    m_pad, c_pad = y2.shape
    nt = m_pad // block_m
    row_spec = pl.BlockSpec((block_m, c_pad), lambda i: (i, 0))
    vec_spec = pl.BlockSpec((1, c_pad), lambda i: (0, 0))
    return pl.pallas_call(
        residual_merge_kernel,
        out_shape=jax.ShapeDtypeStruct((m_pad, c_pad), jnp.float32),
        grid=(nt,),
        in_specs=[row_spec, vec_spec, vec_spec, row_spec, vec_spec, vec_spec],
        out_specs=row_spec,
        compiler_params=_PARALLEL_1D,
    )(y2, sc2, sh2, yd, scd, shd)


# ---------------------------------------------------------------------------
# JAX glue: im2col (NHWC), weight packing, BN scale/shift folding
# ---------------------------------------------------------------------------
def _im2col_nhwc(x, k, stride, pad):
    """x: (N, H, W, C) -> patches (N*Ho*Wo, k*k*C) in (kh, kw, c) column order."""
    n, h, w, c = x.shape
    xp = jnp.pad(x, ((0, 0), (pad, pad), (pad, pad), (0, 0)))
    ho = (h + 2 * pad - k) // stride + 1
    wo = (w + 2 * pad - k) // stride + 1
    cols = []
    for kh in range(k):
        for kw in range(k):
            cols.append(xp[:, kh:kh + (ho - 1) * stride + 1:stride,
                              kw:kw + (wo - 1) * stride + 1:stride, :])
    p = jnp.stack(cols, axis=3)                 # (N, Ho, Wo, k*k, C)
    return p.reshape(n * ho * wo, k * k * c), ho, wo


def _weight_matrix(w, k_pad, c_pad):
    """(Cout, Cin, KH, KW) -> (K_pad, C_pad), rows in (kh, kw, cin) order."""
    cout = w.shape[0]
    wm = jnp.transpose(w, (2, 3, 1, 0)).reshape(-1, cout)
    return _pad2(wm, k_pad, c_pad)


def _bn_scale_shift(stats, count, gamma, beta, c_pad):
    """Fold training-mode BN (biased variance) into per-channel scale/shift (f32)."""
    gamma_p = _pad2(gamma, 1, c_pad)
    beta_p = _pad2(beta, 1, c_pad)
    mean = stats[0:1, :] / count
    var = jnp.maximum(stats[1:2, :] / count - mean * mean, 0.0)
    scale = gamma_p * jax.lax.rsqrt(var + EPS)
    shift = beta_p - mean * scale
    return scale, shift


def init_params(key, in_channels, out_channels, kernel_size):
    k1, k2, k3 = jax.random.split(key, 3)
    scale1 = 1.0 / jnp.sqrt(in_channels * kernel_size * kernel_size)
    scale2 = 1.0 / jnp.sqrt(out_channels * kernel_size * kernel_size)
    scale3 = 1.0 / jnp.sqrt(in_channels)
    return {
        "w1": scale1 * jax.random.normal(
            k1, (out_channels, in_channels, kernel_size, kernel_size), jnp.float32),
        "g1": jnp.ones((1, out_channels), jnp.float32),
        "b1": jnp.zeros((1, out_channels), jnp.float32),
        "w2": scale2 * jax.random.normal(
            k2, (out_channels, out_channels, kernel_size, kernel_size), jnp.float32),
        "g2": jnp.ones((1, out_channels), jnp.float32),
        "b2": jnp.zeros((1, out_channels), jnp.float32),
        "wd": scale3 * jax.random.normal(
            k3, (out_channels, in_channels, 1, 1), jnp.float32),
        "gd": jnp.ones((1, out_channels), jnp.float32),
        "bd": jnp.zeros((1, out_channels), jnp.float32),
    }


@functools.partial(jax.jit,
                   static_argnames=("kernel_size", "stride", "block_m", "compute_dtype"))
def residual_block_forward(x, params, *, kernel_size, stride,
                           block_m=256, compute_dtype=jnp.float32):
    n, cin, h, w = x.shape
    cout = params["w1"].shape[0]
    c_pad = _round_up(cout, 128)                 # lane-dense outputs / matmul N dim

    # External interface is NCHW (PyTorch); everything internal is NHWC.
    x_nhwc = jnp.transpose(x, (0, 2, 3, 1)).astype(compute_dtype)

    # ---- conv1: im2col + tiled matmul with fused BN stats ----
    p1, ho, wo = _im2col_nhwc(x_nhwc, kernel_size, stride, pad=1)
    m = n * ho * wo
    bm = min(block_m, _round_up(m, 8))
    m_pad = _round_up(m, bm)
    k1_pad = _round_up(p1.shape[1], 128)
    p1 = _pad2(p1, m_pad, k1_pad)
    w1m = _weight_matrix(params["w1"], k1_pad, c_pad).astype(compute_dtype)
    y1, stats1 = _conv_matmul_stats(p1, w1m, bm)

    # ---- bn1 + relu (tiled elementwise) ----
    sc1, sh1 = _bn_scale_shift(stats1, m, params["g1"], params["b1"], c_pad)
    a1 = _scale_shift_relu(y1, sc1, sh1, bm, compute_dtype)      # (M_pad, C_pad), NHWC-flat

    # ---- conv2 + downsample: two tiled matmuls with fused BN stats ----
    a1_nhwc = a1[:m, :cout].reshape(n, ho, wo, cout)             # stays NHWC (no NCHW trip)
    p2, ho2, wo2 = _im2col_nhwc(a1_nhwc, kernel_size, 1, pad=1)
    assert (ho2, wo2) == (ho, wo)
    k2_pad = _round_up(p2.shape[1], 128)
    p2 = _pad2(p2, m_pad, k2_pad)
    w2m = _weight_matrix(params["w2"], k2_pad, c_pad).astype(compute_dtype)
    y2, stats2 = _conv_matmul_stats(p2, w2m, bm)

    pd = x_nhwc[:, ::stride, ::stride, :].reshape(m, cin)        # 1x1 conv, stride s, pad 0
    kd_pad = _round_up(cin, 128)
    pd = _pad2(pd, m_pad, kd_pad)
    wdm = _weight_matrix(params["wd"], kd_pad, c_pad).astype(compute_dtype)
    yd, statsd = _conv_matmul_stats(pd, wdm, bm)

    # ---- bn2 + bn_d + residual add + relu (tiled elementwise) ----
    sc2, sh2 = _bn_scale_shift(stats2, m, params["g2"], params["b2"], c_pad)
    scd, shd = _bn_scale_shift(statsd, m, params["gd"], params["bd"], c_pad)
    out = _residual_merge(y2, sc2, sh2, yd, scd, shd, bm)        # (M_pad, C_pad) f32

    out = out[:m, :cout].reshape(n, ho, wo, cout)
    return jnp.transpose(out, (0, 3, 1, 2))                      # back to NCHW interface


# ---------------------------------------------------------------------------
# Pure-JAX reference (mirrors PyTorch training-mode forward) for verification
# ---------------------------------------------------------------------------
def _conv_nchw(x, w, stride, pad):
    return jax.lax.conv_general_dilated(
        x, w, window_strides=(stride, stride),
        padding=((pad, pad), (pad, pad)),
        dimension_numbers=("NCHW", "OIHW", "NCHW"))


def _bn_nchw(y, g, b):
    mean = y.mean(axis=(0, 2, 3), keepdims=True)
    var = jnp.square(y - mean).mean(axis=(0, 2, 3), keepdims=True)
    return (y - mean) * jax.lax.rsqrt(var + EPS) * g.reshape(1, -1, 1, 1) + b.reshape(1, -1, 1, 1)


def residual_block_reference(x, params, *, kernel_size, stride):
    out = _conv_nchw(x, params["w1"], stride, 1)
    out = jnp.maximum(_bn_nchw(out, params["g1"], params["b1"]), 0.0)
    out = _conv_nchw(out, params["w2"], 1, 1)
    out = _bn_nchw(out, params["g2"], params["b2"])
    identity = _bn_nchw(_conv_nchw(x, params["wd"], stride, 0),
                        params["gd"], params["bd"])
    return jnp.maximum(out + identity, 0.0)


if __name__ == "__main__":
    key = jax.random.PRNGKey(0)
    k_x, k_p = jax.random.split(key)

    in_channels, out_channels, kernel_size, stride = 4, 8, 3, 2
    x = jax.random.normal(k_x, (2, in_channels, 16, 16), jnp.float32)
    params = init_params(k_p, in_channels, out_channels, kernel_size)

    y_ref = residual_block_reference(x, params, kernel_size=kernel_size, stride=stride)

    # f32 path; block_m=64 so the small test exercises a multi-tile M grid.
    y = residual_block_forward(x, params, kernel_size=kernel_size, stride=stride,
                               block_m=64, compute_dtype=jnp.float32)
    y = jax.block_until_ready(y)
    assert y.shape == y_ref.shape == (2, out_channels, 8, 8)
    assert jnp.allclose(y, y_ref, atol=5e-3, rtol=5e-3), \
        float(jnp.max(jnp.abs(y - y_ref)))

    # bf16 MXU-input path (v6e/v7x); BN math stays f32, looser tolerance.
    y_bf = residual_block_forward(x, params, kernel_size=kernel_size, stride=stride,
                                  block_m=64, compute_dtype=jnp.bfloat16)
    y_bf = jax.block_until_ready(y_bf)
    assert jnp.allclose(y_bf, y_ref, atol=1e-1, rtol=1e-1)

    print("KERNEL_OK")
</pallas_src>

<mosaic_0001>
module attributes {stable_mosaic.version = 11 : i64} {
  func.func @matmul_stats_kernel(%arg0: i32, %arg1: memref<64x128xf32, #tpu.memory_space<vmem>>, %arg2: memref<128x128xf32, #tpu.memory_space<vmem>>, %arg3: memref<64x128xf32, #tpu.memory_space<vmem>>, %arg4: memref<8x128xf32, #tpu.memory_space<vmem>>) attributes {dimension_semantics = [#tpu.dimension_semantics<parallel>], iteration_bounds = array<i64: 2>, scalar_prefetch = 0 : i64, scratch_operands = 0 : i64, tpu.core_type = #tpu.core_type<tc>, window_params = [{transform_indices = @transform_0, window_bounds = array<i64: 64, 128>}, {pipeline_mode = #tpu.pipeline_mode<synchronous>, transform_indices = @transform_1, window_bounds = array<i64: 128, 128>}, {transform_indices = @transform_2, window_bounds = array<i64: 64, 128>}, {transform_indices = @transform_3, window_bounds = array<i64: 8, 128>}]} {
    %c0 = arith.constant 0 : index
    %c0_0 = arith.constant 0 : index
    %0 = vector.load %arg1[%c0, %c0_0] : memref<64x128xf32, #tpu.memory_space<vmem>>, vector<64x128xf32>
    %c0_1 = arith.constant 0 : index
    %c0_2 = arith.constant 0 : index
    %1 = vector.load %arg2[%c0_1, %c0_2] : memref<128x128xf32, #tpu.memory_space<vmem>>, vector<128x128xf32>
    %cst = arith.constant dense<0.000000e+00> : vector<64x128xf32>
    %2 = tpu.matmul %0, %1, %cst {dimension_numbers = #tpu.dot_dimension_numbers<[1], [0], [0], [1], [0, 0, 1, 1], [], []>} : vector<64x128xf32>, vector<128x128xf32>, vector<64x128xf32> -> vector<64x128xf32>
    %c0_3 = arith.constant 0 : index
    %c0_4 = arith.constant 0 : index
    %3 = vector.load %arg3[%c0_3, %c0_4] : memref<64x128xf32, #tpu.memory_space<vmem>>, vector<64x128xf32>
    tpu.vector_store %arg3[%c0_3, %c0_4], %2 {strides = array<i32>} : memref<64x128xf32, #tpu.memory_space<vmem>>, vector<64x128xf32>,
    %cst_5 = arith.constant dense<0.000000e+00> : vector<128xf32>
    %4 = vector.multi_reduction <add>, %2, %cst_5 [0] : vector<64x128xf32> to vector<128xf32>
    %5 = vector.shape_cast %4 : vector<128xf32> to vector<1x128xf32>
    %6 = arith.mulf %2, %2 : vector<64x128xf32>
    %cst_6 = arith.constant dense<0.000000e+00> : vector<128xf32>
    %7 = vector.multi_reduction <add>, %6, %cst_6 [0] : vector<64x128xf32> to vector<128xf32>
    %8 = vector.shape_cast %7 : vector<128xf32> to vector<1x128xf32>
    %9 = tpu.iota {dimensions = array<i32: 0>} : vector<8x128xi32>
    %c0_i32 = arith.constant 0 : i32
    %10 = vector.broadcast %c0_i32 : i32 to vector<8x128xi32>
    %11 = arith.cmpi eq, %9, %10 : vector<8x128xi32>
    %c1_i32 = arith.constant 1 : i32
    %12 = vector.broadcast %c1_i32 : i32 to vector<8x128xi32>
    %13 = arith.cmpi eq, %9, %12 : vector<8x128xi32>
    %cst_7 = arith.constant 0.000000e+00 : f32
    %14 = vector.shape_cast %8 : vector<1x128xf32> to vector<1x128xf32>
    %15 = vector.broadcast %14 : vector<1x128xf32> to vector<8x128xf32>
    %16 = vector.broadcast %cst_7 : f32 to vector<8x128xf32>
    %17 = arith.select %13, %15, %16 : vector<8x128xi1>, vector<8x128xf32>
    %18 = vector.shape_cast %5 : vector<1x128xf32> to vector<1x128xf32>
    %19 = vector.broadcast %18 : vector<1x128xf32> to vector<8x128xf32>
    %20 = arith.select %11, %19, %17 : vector<8x128xi1>, vector<8x128xf32>
    %c0_8 = arith.constant 0 : index
    %c0_9 = arith.constant 0 : index
    %21 = vector.load %arg4[%c0_8, %c0_9] : memref<8x128xf32, #tpu.memory_space<vmem>>, vector<8x128xf32>
    tpu.vector_store %arg4[%c0_8, %c0_9], %20 {strides = array<i32>} : memref<8x128xf32, #tpu.memory_space<vmem>>, vector<8x128xf32>,
    return
  }
  func.func @transform_0(%arg0: i32) -> (i32, i32) {
    %c0_i32 = arith.constant 0 : i32
    %c0_i32_0 = arith.constant 0 : i32
    return %arg0, %c0_i32 : i32, i32
  }
  func.func @transform_1(%arg0: i32) -> (i32, i32) {
    %c0_i32 = arith.constant 0 : i32
    %c0_i32_0 = arith.constant 0 : i32
    %c0_i32_1 = arith.constant 0 : i32
    return %c0_i32, %c0_i32_0 : i32, i32
  }
  func.func @transform_2(%arg0: i32) -> (i32, i32) {
    %c0_i32 = arith.constant 0 : i32
    %c0_i32_0 = arith.constant 0 : i32
    return %arg0, %c0_i32 : i32, i32
  }
  func.func @transform_3(%arg0: i32) -> (i32, i32) {
    %c0_i32 = arith.constant 0 : i32
    %c0_i32_0 = arith.constant 0 : i32
    return %arg0, %c0_i32 : i32, i32
  }
}

module attributes {stable_mosaic.version = 11 : i64} {
  func.func @scale_shift_relu_kernel(%arg0: i32, %arg1: memref<64x128xf32, #tpu.memory_space<vmem>>, %arg2: memref<1x128xf32, #tpu.memory_space<vmem>>, %arg3: memref<1x128xf32, #tpu.memory_space<vmem>>, %arg4: memref<64x128xf32, #tpu.memory_space<vmem>>) attributes {dimension_semantics = [#tpu.dimension_semantics<parallel>], iteration_bounds = array<i64: 2>, scalar_prefetch = 0 : i64, scratch_operands = 0 : i64, tpu.core_type = #tpu.core_type<tc>, window_params = [{transform_indices = @transform_0, window_bounds = array<i64: 64, 128>}, {pipeline_mode = #tpu.pipeline_mode<synchronous>, transform_indices = @transform_1, window_bounds = array<i64: 1, 128>}, {pipeline_mode = #tpu.pipeline_mode<synchronous>, transform_indices = @transform_2, window_bounds = array<i64: 1, 128>}, {transform_indices = @transform_3, window_bounds = array<i64: 64, 128>}]} {
    %c0 = arith.constant 0 : index
    %c0_0 = arith.constant 0 : index
    %0 = vector.load %arg1[%c0, %c0_0] : memref<64x128xf32, #tpu.memory_space<vmem>>, vector<64x128xf32>
    %c0_1 = arith.constant 0 : index
    %c0_2 = arith.constant 0 : index
    %1 = vector.load %arg2[%c0_1, %c0_2] : memref<1x128xf32, #tpu.memory_space<vmem>>, vector<1x128xf32>
    %2 = vector.broadcast %1 : vector<1x128xf32> to vector<64x128xf32>
    %3 = arith.mulf %0, %2 : vector<64x128xf32>
    %c0_3 = arith.constant 0 : index
    %c0_4 = arith.constant 0 : index
    %4 = vector.load %arg3[%c0_3, %c0_4] : memref<1x128xf32, #tpu.memory_space<vmem>>, vector<1x128xf32>
    %5 = vector.broadcast %4 : vector<1x128xf32> to vector<64x128xf32>
    %6 = arith.addf %3, %5 : vector<64x128xf32>
    %cst = arith.constant 0.000000e+00 : f32
    %7 = vector.broadcast %cst : f32 to vector<64x128xf32>
    %8 = arith.maximumf %6, %7 : vector<64x128xf32>
    %c0_5 = arith.constant 0 : index
    %c0_6 = arith.constant 0 : index
    %9 = vector.load %arg4[%c0_5, %c0_6] : memref<64x128xf32, #tpu.memory_space<vmem>>, vector<64x128xf32>
    tpu.vector_store %arg4[%c0_5, %c0_6], %8 {strides = array<i32>} : memref<64x128xf32, #tpu.memory_space<vmem>>, vector<64x128xf32>,
    return
  }
  func.func @transform_0(%arg0: i32) -> (i32, i32) {
    %c0_i32 = arith.constant 0 : i32
    %c0_i32_0 = arith.constant 0 : i32
    return %arg0, %c0_i32 : i32, i32
  }
  func.func @transform_1(%arg0: i32) -> (i32, i32) {
    %c0_i32 = arith.constant 0 : i32
    %c0_i32_0 = arith.constant 0 : i32
    %c0_i32_1 = arith.constant 0 : i32
    return %c0_i32, %c0_i32_0 : i32, i32
  }
  func.func @transform_2(%arg0: i32) -> (i32, i32) {
    %c0_i32 = arith.constant 0 : i32
    %c0_i32_0 = arith.constant 0 : i32
    %c0_i32_1 = arith.constant 0 : i32
    return %c0_i32, %c0_i32_0 : i32, i32
  }
  func.func @transform_3(%arg0: i32) -> (i32, i32) {
    %c0_i32 = arith.constant 0 : i32
    %c0_i32_0 = arith.constant 0 : i32
    return %arg0, %c0_i32 : i32, i32
  }
}

module attributes {stable_mosaic.version = 11 : i64} {
  func.func @residual_merge_kernel(%arg0: i32, %arg1: memref<64x128xf32, #tpu.memory_space<vmem>>, %arg2: memref<1x128xf32, #tpu.memory_space<vmem>>, %arg3: memref<1x128xf32, #tpu.memory_space<vmem>>, %arg4: memref<64x128xf32, #tpu.memory_space<vmem>>, %arg5: memref<1x128xf32, #tpu.memory_space<vmem>>, %arg6: memref<1x128xf32, #tpu.memory_space<vmem>>, %arg7: memref<64x128xf32, #tpu.memory_space<vmem>>) attributes {dimension_semantics = [#tpu.dimension_semantics<parallel>], iteration_bounds = array<i64: 2>, scalar_prefetch = 0 : i64, scratch_operands = 0 : i64, tpu.core_type = #tpu.core_type<tc>, window_params = [{transform_indices = @transform_0, window_bounds = array<i64: 64, 128>}, {pipeline_mode = #tpu.pipeline_mode<synchronous>, transform_indices = @transform_1, window_bounds = array<i64: 1, 128>}, {pipeline_mode = #tpu.pipeline_mode<synchronous>, transform_indices = @transform_2, window_bounds = array<i64: 1, 128>}, {transform_indices = @transform_3, window_bounds = array<i64: 64, 128>}, {pipeline_mode = #tpu.pipeline_mode<synchronous>, transform_indices = @transform_4, window_bounds = array<i64: 1, 128>}, {pipeline_mode = #tpu.pipeline_mode<synchronous>, transform_indices = @transform_5, window_bounds = array<i64: 1, 128>}, {transform_indices = @transform_6, window_bounds = array<i64: 64, 128>}]} {
    %c0 = arith.constant 0 : index
    %c0_0 = arith.constant 0 : index
    %0 = vector.load %arg1[%c0, %c0_0] : memref<64x128xf32, #tpu.memory_space<vmem>>, vector<64x128xf32>
    %c0_1 = arith.constant 0 : index
    %c0_2 = arith.constant 0 : index
    %1 = vector.load %arg2[%c0_1, %c0_2] : memref<1x128xf32, #tpu.memory_space<vmem>>, vector<1x128xf32>
    %2 = vector.broadcast %1 : vector<1x128xf32> to vector<64x128xf32>
    %3 = arith.mulf %0, %2 : vector<64x128xf32>
    %c0_3 = arith.constant 0 : index
    %c0_4 = arith.constant 0 : index
    %4 = vector.load %arg3[%c0_3, %c0_4] : memref<1x128xf32, #tpu.memory_space<vmem>>, vector<1x128xf32>
    %5 = vector.broadcast %4 : vector<1x128xf32> to vector<64x128xf32>
    %6 = arith.addf %3, %5 : vector<64x128xf32>
    %c0_5 = arith.constant 0 : index
    %c0_6 = arith.constant 0 : index
    %7 = vector.load %arg4[%c0_5, %c0_6] : memref<64x128xf32, #tpu.memory_space<vmem>>, vector<64x128xf32>
    %c0_7 = arith.constant 0 : index
    %c0_8 = arith.constant 0 : index
    %8 = vector.load %arg5[%c0_7, %c0_8] : memref<1x128xf32, #tpu.memory_space<vmem>>, vector<1x128xf32>
    %9 = vector.broadcast %8 : vector<1x128xf32> to vector<64x128xf32>
    %10 = arith.mulf %7, %9 : vector<64x128xf32>
    %c0_9 = arith.constant 0 : index
    %c0_10 = arith.constant 0 : index
    %11 = vector.load %arg6[%c0_9, %c0_10] : memref<1x128xf32, #tpu.memory_space<vmem>>, vector<1x128xf32>
    %12 = vector.broadcast %11 : vector<1x128xf32> to vector<64x128xf32>
    %13 = arith.addf %10, %12 : vector<64x128xf32>
    %14 = arith.addf %6, %13 : vector<64x128xf32>
    %cst = arith.constant 0.000000e+00 : f32
    %15 = vector.broadcast %cst : f32 to vector<64x128xf32>
    %16 = arith.maximumf %14, %15 : vector<64x128xf32>
    %c0_11 = arith.constant 0 : index
    %c0_12 = arith.constant 0 : index
    %17 = vector.load %arg7[%c0_11, %c0_12] : memref<64x128xf32, #tpu.memory_space<vmem>>, vector<64x128xf32>
    tpu.vector_store %arg7[%c0_11, %c0_12], %16 {strides = array<i32>} : memref<64x128xf32, #tpu.memory_space<vmem>>, vector<64x128xf32>,
    return
  }
  func.func @transform_0(%arg0: i32) -> (i32, i32) {
    %c0_i32 = arith.constant 0 : i32
    %c0_i32_0 = arith.constant 0 : i32
    return %arg0, %c0_i32 : i32, i32
  }
  func.func @transform_1(%arg0: i32) -> (i32, i32) {
    %c0_i32 = arith.constant 0 : i32
    %c0_i32_0 = arith.constant 0 : i32
    %c0_i32_1 = arith.constant 0 : i32
    return %c0_i32, %c0_i32_0 : i32, i32
  }
  func.func @transform_2(%arg0: i32) -> (i32, i32) {
    %c0_i32 = arith.constant 0 : i32
    %c0_i32_0 = arith.constant 0 : i32
    %c0_i32_1 = arith.constant 0 : i32
    return %c0_i32, %c0_i32_0 : i32, i32
  }
  func.func @transform_3(%arg0: i32) -> (i32, i32) {
    %c0_i32 = arith.constant 0 : i32
    %c0_i32_0 = arith.constant 0 : i32
    return %arg0, %c0_i32 : i32, i32
  }
  func.func @transform_4(%arg0: i32) -> (i32, i32) {
    %c0_i32 = arith.constant 0 : i32
    %c0_i32_0 = arith.constant 0 : i32
    %c0_i32_1 = arith.constant 0 : i32
    return %c0_i32, %c0_i32_0 : i32, i32
  }
  func.func @transform_5(%arg0: i32) -> (i32, i32) {
    %c0_i32 = arith.constant 0 : i32
    %c0_i32_0 = arith.constant 0 : i32
    %c0_i32_1 = arith.constant 0 : i32
    return %c0_i32, %c0_i32_0 : i32, i32
  }
  func.func @transform_6(%arg0: i32) -> (i32, i32) {
    %c0_i32 = arith.constant 0 : i32
    %c0_i32_0 = arith.constant 0 : i32
    return %arg0, %c0_i32 : i32, i32
  }
}

</mosaic_0001>

<bundles_post_ra>
// kernel: residual_block_forward.5
= control target key start
LH: loop header
LB: loop body
LE: loop exit
PB: predicated region body
PF: predicated region fallthrough
CT: control target
= control target key end

     0   :  { %s482_s12 = smov 0   ;;  %s572_s0 = inlined_call_operand.vmem [shape: f32[128,128], index: 0, kind: input, shape index: {}]   ;;  %s573_s1 = inlined_call_operand.vmem [shape: f32[128,128], index: 1, kind: input, shape index: {}]   ;;  %s574_s2 = inlined_call_operand.vmem [shape: f32[128,128], index: 2, kind: output, shape index: {0}]   ;;  %s575_s3 = inlined_call_operand.vmem [shape: f32[16,128], index: 3, kind: output, shape index: {1}]  }
   0x1 LB: > { %s488_s13 = sadd.s32 4294967295, %s460_s12   ;;  %p390_p0 = scmp.ge.s32.totalorder %s460_s12, 1  ;;  %s460_s12 = sphi %s482_s12, %s14_s12  }
   0x2   : > { %p141_p1 = scmp.lt.s32.totalorder %s460_s12, 3 }
   0x4   : > { %p142_p2 = pnand %p390_p0, %p141_p1 }
   0x5   : > { %s391_s30 = sshll.u32 (!%p142_p2), %s488_s13, 3  ;;  %p181_p4 = scmp.lt.s32.totalorder (!%p142_p2), %s488_s13, 1 }
   0x6   : > { %145 = sbr.rel (%p142_p2) target bundleno = 208 (0xd0), region = 28  ;;  %p170_p3 = scmp.lt.s32.totalorder (!%p142_p2), %s391_s30, 15 }
   0xb   : > { %v208_v0 = vld [vmem:[%s573_s1 + $0x78] sm:$0xff]  ;;  %v207_v1 = vld [vmem:[%s573_s1 + $0x70] sm:$0xff]  ;;  %v206_v2 = vld [vmem:[%s573_s1 + $0x68] sm:$0xff]  ;;  %s577_s30 = smov (!%p170_p3, %s391_s30), 15  ;;  %v292_v57 = vlaneseq  ;;  %s579_s13 = smov (!%p181_p4, %s488_s13), 1 }
   0xc   : > { %209 = vmatpush.msra.mxu0 %v208_v0  ;;  %399 = vmatpush.msra.mxu2 %v208_v0  ;;  %v205_v3 = vld [vmem:[%s573_s1 + $0x60] sm:$0xff]  ;;  %v204_v4 = vld [vmem:[%s573_s1 + $0x58] sm:$0xff]  ;;  %v203_v5 = vld [vmem:[%s573_s1 + $0x50] sm:$0xff]  ;;  %s392_s16 = sshll.u32 %s577_s30, 3  ;;  %s395_s29 = sshll.u32 %s579_s13, 3 }
   0xd   : > { %398 = vmatpush.msra.mxu1 %v208_v0  ;;  %400 = vmatpush.msra.mxu3 %v208_v0  ;;  %v202_v6 = vld [vmem:[%s573_s1 + $0x48] sm:$0xff]  ;;  %v201_v7 = vld [vmem:[%s573_s1 + $0x40] sm:$0xff]  ;;  %v200_v8 = vld [vmem:[%s573_s1 + $0x38] sm:$0xff]  ;;  %s173_s23 = scalar_lea.vmem %s572_s0, %s392_s16  ;;  %s554_s28 = scalar_lea.vmem %s574_s2, %s392_s16  ;;  %v293_v62 = vshrl.u32 %v292_v57, 7 }
   0xe   : > { %210 = vmatpush.msra.mxu0 %v207_v1  ;;  %402 = vmatpush.msra.mxu2 %v207_v1  ;;  %v199_v9 = vld [vmem:[%s573_s1 + $0x30] sm:$0xff]  ;;  %v198_v10 = vld [vmem:[%s573_s1 + $0x28] sm:$0xff]  ;;  %v197_v11 = vld [vmem:[%s573_s1 + $0x20] sm:$0xff]  ;;  %s184_s5 = scalar_lea.vmem %s575_s3, %s395_s29 }
   0xf   : > { %401 = vmatpush.msra.mxu1 %v207_v1  ;;  %403 = vmatpush.msra.mxu3 %v207_v1  ;;  %v196_v12 = vld [vmem:[%s573_s1 + $0x18] sm:$0xff]  ;;  %v195_v13 = vld [vmem:[%s573_s1 + $0x10] sm:$0xff]  ;;  %v194_v14 = vld [vmem:[%s573_s1 + $0x8] sm:$0xff]  ;;  %vm295_vm0 = vcmp.eq.s32.totalorder %v293_v62, 1  ;;  %vm294_vm1 = vcmp.eq.s32.totalorder %v293_v62, 0 }
  0x10   : > { %211 = vmatpush.msra.mxu0 %v206_v2  ;;  %405 = vmatpush.msra.mxu2 %v206_v2  ;;  %v193_v15 = vld [vmem:[%s573_s1] sm:$0xff]  ;;  %v187_v18 = vld [vmem:[%s173_s23 + $0x10] sm:$0xff]  ;;  %v186_v20 = vld [vmem:[%s173_s23 + $0x8] sm:$0xff] }
  0x11   : > { %404 = vmatpush.msra.mxu1 %v206_v2  ;;  %406 = vmatpush.msra.mxu3 %v206_v2  ;;  %v185_v16 = vld [vmem:[%s173_s23] sm:$0xff]  ;;  %v191_v19 = vld [vmem:[%s173_s23 + $0x30] sm:$0xff]  ;;  %v190_v21 = vld [vmem:[%s173_s23 + $0x28] sm:$0xff] }
  0x12   : > { %212 = vmatpush.msra.mxu0 %v205_v3  ;;  %408 = vmatpush.msra.mxu2 %v205_v3  ;;  %v189_v17 = vld [vmem:[%s173_s23 + $0x20] sm:$0xff]  ;;  %v188_v22 = vld [vmem:[%s173_s23 + $0x18] sm:$0xff] }
  0x13   : > { %407 = vmatpush.msra.mxu1 %v205_v3  ;;  %409 = vmatpush.msra.mxu3 %v205_v3  ;;  %v192_v23 = vld [vmem:[%s173_s23 + $0x38] sm:$0xff] }
  0x14   : > { %213 = vmatpush.msra.mxu0 %v204_v4  ;;  %411 = vmatpush.msra.mxu2 %v204_v4 }
  0x15   : > { %410 = vmatpush.msra.mxu1 %v204_v4  ;;  %412 = vmatpush.msra.mxu3 %v204_v4 }
  0x16   : > { %214 = vmatpush.msra.mxu0 %v203_v5  ;;  %414 = vmatpush.msra.mxu2 %v203_v5 }
  0x17   : > { %413 = vmatpush.msra.mxu1 %v203_v5  ;;  %415 = vmatpush.msra.mxu3 %v203_v5 }
  0x18   : > { %215 = vmatpush.msra.mxu0 %v202_v6  ;;  %417 = vmatpush.msra.mxu2 %v202_v6 }
  0x19   : > { %416 = vmatpush.msra.mxu1 %v202_v6  ;;  %418 = vmatpush.msra.mxu3 %v202_v6 }
  0x1a   : > { %216 = vmatpush.msra.mxu0 %v201_v7  ;;  %420 = vmatpush.msra.mxu2 %v201_v7 }
  0x1b   : > { %419 = vmatpush.msra.mxu1 %v201_v7  ;;  %421 = vmatpush.msra.mxu3 %v201_v7 }
  0x1c   : > { %217 = vmatpush.msra.mxu0 %v200_v8  ;;  %423 = vmatpush.msra.mxu2 %v200_v8 }
  0x1d   : > { %422 = vmatpush.msra.mxu1 %v200_v8  ;;  %424 = vmatpush.msra.mxu3 %v200_v8 }
  0x1e   : > { %218 = vmatpush.msra.mxu0 %v199_v9  ;;  %426 = vmatpush.msra.mxu2 %v199_v9 }
  0x1f   : > { %425 = vmatpush.msra.mxu1 %v199_v9  ;;  %427 = vmatpush.msra.mxu3 %v199_v9 }
  0x20   : > { %219 = vmatpush.msra.mxu0 %v198_v10  ;;  %429 = vmatpush.msra.mxu2 %v198_v10 }
  0x21   : > { %428 = vmatpush.msra.mxu1 %v198_v10  ;;  %430 = vmatpush.msra.mxu3 %v198_v10 }
  0x22   : > { %220 = vmatpush.msra.mxu0 %v197_v11  ;;  %432 = vmatpush.msra.mxu2 %v197_v11 }
  0x23   : > { %431 = vmatpush.msra.mxu1 %v197_v11  ;;  %433 = vmatpush.msra.mxu3 %v197_v11 }
  0x24   : > { %221 = vmatpush.msra.mxu0 %v196_v12  ;;  %435 = vmatpush.msra.mxu2 %v196_v12 }
  0x25   : > { %434 = vmatpush.msra.mxu1 %v196_v12  ;;  %436 = vmatpush.msra.mxu3 %v196_v12 }
  0x26   : > { %222 = vmatpush.msra.mxu0 %v195_v13  ;;  %438 = vmatpush.msra.mxu2 %v195_v13 }
  0x27   : > { %437 = vmatpush.msra.mxu1 %v195_v13  ;;  %439 = vmatpush.msra.mxu3 %v195_v13 }
  0x28   : > { %223 = vmatpush.msra.mxu0 %v194_v14  ;;  %441 = vmatpush.msra.mxu2 %v194_v14 }
  0x29   : > { %440 = vmatpush.msra.mxu1 %v194_v14  ;;  %442 = vmatpush.msra.mxu3 %v194_v14 }
  0x2a   : > { %224 = vmatpush.msra.mxu0 %v193_v15  ;;  %444 = vmatpush.msra.mxu2 %v193_v15 }
  0x2b   : > { %225 = vmatmul.f32.vlgmr.msra.gmra.mxu0 %v185_v16  ;;  %237 = vmatmul.f32.vlgmr.msra.gmra.mxu2 %v189_v17 }
  0x2c   : > { %443 = vmatpush.msra.mxu1 %v193_v15  ;;  %445 = vmatpush.msra.mxu3 %v193_v15 }
  0x2d   : > { %231 = vmatmul.f32.vlgmr.msra.gmra.mxu1 %v187_v18  ;;  %243 = vmatmul.f32.vlgmr.msra.gmra.mxu3 %v191_v19 }
  0x33   : > { %228 = vmatmul.f32.gmra.mxu0 %v186_v20  ;;  %240 = vmatmul.f32.gmra.mxu2 %v190_v21 }
  0x35   : > { %234 = vmatmul.f32.gmra.mxu1 %v188_v22  ;;  %246 = vmatmul.f32.gmra.mxu3 %v192_v23 }
  0xa8   : > { %v226_v24 = vpop.f32.mrf.mxu0 }
  0xa9   : > { %250 = vst [vmem:[%s554_s28] sm:$0xff] %v226_v24  ;;  %v271_v29 = vmul.f32 %v226_v24, %v226_v24 }
  0xaa   : > { %v232_v25 = vpop.f32.mrf.mxu1 }
  0xab   : > { %252 = vst [vmem:[%s554_s28 + $0x10] sm:$0xff] %v232_v25  ;;  %v273_v33 = vmul.f32 %v232_v25, %v232_v25 }
  0xae   : > { %v238_v26 = vpop.f32.mrf.mxu2 }
  0xaf   : > { %254 = vst [vmem:[%s554_s28 + $0x20] sm:$0xff] %v238_v26  ;;  %v275_v40 = vmul.f32 %v238_v26, %v238_v26 }
  0xb0   : > { %v229_v27 = vpop.f32.mrf.mxu0  ;;  %v244_v28 = vpop.f32.mrf.mxu3 }
  0xb1   : > { %251 = vst [vmem:[%s554_s28 + $0x8] sm:$0xff] %v229_v27  ;;  %v258_v30 = vadd.f32 %v229_v27, %v226_v24  ;;  %v272_v31 = vmul.f32 %v229_v27, %v229_v27  ;;  %v277_v47 = vmul.f32 %v244_v28, %v244_v28 }
  0xb2   : > { %v235_v32 = vpop.f32.mrf.mxu1  ;;  %256 = vst [vmem:[%s554_s28 + $0x30] sm:$0xff] %v244_v28 }
  0xb3   : > { %v279_v34 = vadd.f32 %v272_v31, %v271_v29  ;;  %253 = vst [vmem:[%s554_s28 + $0x18] sm:$0xff] %v235_v32  ;;  %v259_v35 = vadd.f32 %v258_v30, %v232_v25  ;;  %v274_v36 = vmul.f32 %v235_v32, %v235_v32 }
  0xb5   : > { %v260_v37 = vadd.f32 %v259_v35, %v235_v32  ;;  %v280_v38 = vadd.f32 %v279_v34, %v273_v33 }
  0xb6   : > { %v241_v39 = vpop.f32.mrf.mxu2 }
  0xb7   : > { %v281_v41 = vadd.f32 %v280_v38, %v274_v36  ;;  %255 = vst [vmem:[%s554_s28 + $0x28] sm:$0xff] %v241_v39  ;;  %v261_v42 = vadd.f32 %v260_v37, %v238_v26  ;;  %v276_v43 = vmul.f32 %v241_v39, %v241_v39 }
  0xb8   : > { %v247_v44 = vpop.f32.mrf.mxu3 }
  0xb9   : > { %v262_v45 = vadd.f32 %v261_v42, %v241_v39  ;;  %v282_v46 = vadd.f32 %v281_v41, %v275_v40  ;;  %257 = vst [vmem:[%s554_s28 + $0x38] sm:$0xff] %v247_v44  ;;  %v278_v50 = vmul.f32 %v247_v44, %v247_v44 }
  0xbb   : > { %v283_v48 = vadd.f32 %v282_v46, %v276_v43  ;;  %v263_v49 = vadd.f32 %v262_v45, %v244_v28 }
  0xbd   : > { %v264_v51 = vadd.f32 %v263_v49, %v247_v44  ;;  %v284_v52 = vadd.f32 %v283_v48, %v277_v47 }
  0xbf   : > { %v265_v53 = vrot.slane %v264_v51, 4  ;;  %v285_v54 = vadd.f32 %v284_v52, %v278_v50 }
  0xc1   : > { %v266_v55 = vadd.f32 %v265_v53, %v264_v51  ;;  %v286_v56 = vrot.slane %v285_v54, 4 }
  0xc3   : > { %v267_v58 = vrot.slane %v266_v55, 2  ;;  %v287_v59 = vadd.f32 %v286_v56, %v285_v54 }
  0xc5   : > { %v268_v60 = vadd.f32 %v267_v58, %v266_v55  ;;  %v288_v61 = vrot.slane %v287_v59, 2 }
  0xc7   : > { %v289_v63 = vadd.f32 %v288_v61, %v287_v59  ;;  %v269_v0 = vrot.slane %v268_v60, 1 }
  0xc9   : > { %v290_v1 = vrot.slane %v289_v63, 1  ;;  %v270_v3 = vadd.f32 %v269_v0, %v268_v60 }
  0xcb   : > { %v291_v2 = vadd.f32 %v290_v1, %v289_v63 }
  0xcd   : > { %v296_v4 = vsel %vm295_vm0, %v291_v2, 0.0 }
  0xce   : > { %v297_v5 = vsel %vm294_vm1, %v270_v3, %v296_v4 }
  0xcf   : > { %298 = vst [vmem:[%s184_s5] sm:$0xff] %v297_v5 }
  0xd0 PF: > { %s14_s12 = sadd.s32 1, %s460_s12  }
  0xd1   : > { %p11_p5 = scmp.ge.s32.totalorder %s14_s12, 4  }
  0xd3   :  { %13 = sbr.rel (!%p11_p5) target bundleno = 1 (0x1), region = 70 }

// kernel: residual_block_forward.6
= control target key start
LH: loop header
LB: loop body
LE: loop exit
PB: predicated region body
PF: predicated region fallthrough
CT: control target
= control target key end

     0   :  { %s327_s12 = smov 0   ;;  %s350_s0 = inlined_call_operand.vmem [shape: f32[128,128], index: 0, kind: input, shape index: {}]   ;;  %s351_s1 = inlined_call_operand.vmem [shape: f32[1,128], index: 1, kind: input, shape index: {}]   ;;  %s352_s2 = inlined_call_operand.vmem [shape: f32[1,128], index: 2, kind: input, shape index: {}]   ;;  %s353_s3 = inlined_call_operand.vmem [shape: f32[128,128], index: 3, kind: output, shape index: {}]  }
   0x1 LB: > { %s278_s13 = sadd.s32 4294967295, %s305_s12   ;;  %p282_p0 = scmp.ge.s32.totalorder %s305_s12, 1  ;;  %s305_s12 = sphi %s327_s12, %s13_s12  }
   0x2   : > { %p138_p1 = scmp.lt.s32.totalorder %s305_s12, 3 }
   0x4   : > { %p139_p2 = pnand %p282_p0, %p138_p1 }
   0x5   : > { %s283_s14 = sshll.u32 (!%p139_p2), %s278_s13, 3 }
   0x6   : > { %142 = sbr.rel (%p139_p2) target bundleno = 29 (0x1d), region = 32  ;;  %p163_p3 = scmp.lt.s32.totalorder (!%p139_p2), %s283_s14, 15 }
   0xb   : > { %s355_s14 = smov (!%p163_p3, %s283_s14), 15  ;;  %v297_v0 = vld [vmem:[%s351_s1] ss:$0 sm:$0xff] }
   0xc   : > { %s284_s17 = sshll.u32 %s355_s14, 3  ;;  %v298_v1 = vld [vmem:[%s352_s2] ss:$0 sm:$0xff] }
   0xd   : > { %s166_s20 = scalar_lea.vmem %s350_s0, %s284_s17  ;;  %s172_s25 = scalar_lea.vmem %s353_s3, %s284_s17 }
   0xe   : > { %v174_v2 = vld [vmem:[%s166_s20] sm:$0xff]  ;;  %v175_v3 = vld [vmem:[%s166_s20 + $0x8] sm:$0xff]  ;;  %v176_v4 = vld [vmem:[%s166_s20 + $0x10] sm:$0xff] }
   0xf   : > { %v186_v5 = vmul.f32 %v297_v0, %v174_v2  ;;  %v187_v6 = vmul.f32 %v297_v0, %v175_v3  ;;  %v188_v7 = vmul.f32 %v297_v0, %v176_v4  ;;  %v177_v8 = vld [vmem:[%s166_s20 + $0x18] sm:$0xff]  ;;  %v178_v9 = vld [vmem:[%s166_s20 + $0x20] sm:$0xff]  ;;  %v179_v10 = vld [vmem:[%s166_s20 + $0x28] sm:$0xff] }
  0x10   : > { %v189_v11 = vmul.f32 %v297_v0, %v177_v8  ;;  %v190_v12 = vmul.f32 %v297_v0, %v178_v9  ;;  %v191_v13 = vmul.f32 %v297_v0, %v179_v10  ;;  %v180_v14 = vld [vmem:[%s166_s20 + $0x30] sm:$0xff]  ;;  %v181_v15 = vld [vmem:[%s166_s20 + $0x38] sm:$0xff] }
  0x11   : > { %v198_v16 = vadd.f32 %v298_v1, %v186_v5  ;;  %v199_v17 = vadd.f32 %v298_v1, %v187_v6  ;;  %v200_v18 = vadd.f32 %v298_v1, %v188_v7  ;;  %v192_v19 = vmul.f32 %v297_v0, %v180_v14 }
  0x12   : > { %v201_v20 = vadd.f32 %v298_v1, %v189_v11  ;;  %v202_v21 = vadd.f32 %v298_v1, %v190_v12  ;;  %v203_v22 = vadd.f32 %v298_v1, %v191_v13  ;;  %v193_v23 = vmul.f32 %v297_v0, %v181_v15 }
  0x13   : > { %v206_v24 = vmax.f32 %v198_v16, 0.0  ;;  %v207_v25 = vmax.f32 %v199_v17, 0.0  ;;  %v208_v26 = vmax.f32 %v200_v18, 0.0  ;;  %v204_v27 = vadd.f32 %v298_v1, %v192_v19 }
  0x14   : > { %v209_v28 = vmax.f32 %v201_v20, 0.0  ;;  %v205_v29 = vadd.f32 %v298_v1, %v193_v23  ;;  %v210_v30 = vmax.f32 %v202_v21, 0.0  ;;  %v211_v31 = vmax.f32 %v203_v22, 0.0 }
  0x15   : > { %214 = vst [vmem:[%s172_s25] sm:$0xff] %v206_v24  ;;  %v212_v32 = vmax.f32 %v204_v27, 0.0 }
  0x16   : > { %215 = vst [vmem:[%s172_s25 + $0x8] sm:$0xff] %v207_v25  ;;  %v213_v33 = vmax.f32 %v205_v29, 0.0 }
  0x17   : > { %216 = vst [vmem:[%s172_s25 + $0x10] sm:$0xff] %v208_v26 }
  0x18   : > { %217 = vst [vmem:[%s172_s25 + $0x18] sm:$0xff] %v209_v28 }
  0x19   : > { %218 = vst [vmem:[%s172_s25 + $0x20] sm:$0xff] %v210_v30 }
  0x1a   : > { %219 = vst [vmem:[%s172_s25 + $0x28] sm:$0xff] %v211_v31 }
  0x1b   : > { %220 = vst [vmem:[%s172_s25 + $0x30] sm:$0xff] %v212_v32 }
  0x1c   : > { %221 = vst [vmem:[%s172_s25 + $0x38] sm:$0xff] %v213_v33 }
  0x1d PF: > { %s13_s12 = sadd.s32 1, %s305_s12  }
  0x1e   : > { %p10_p4 = scmp.ge.s32.totalorder %s13_s12, 4  }
  0x20   :  { %12 = sbr.rel (!%p10_p4) target bundleno = 1 (0x1), region = 62 }

// kernel: residual_block_forward.9
= control target key start
LH: loop header
LB: loop body
LE: loop exit
PB: predicated region body
PF: predicated region fallthrough
CT: control target
= control target key end

     0   :  { %s501_s21 = smov 0   ;;  %s588_s0 = inlined_call_operand.vmem [shape: f32[128,128], index: 0, kind: input, shape index: {}]   ;;  %s589_s1 = inlined_call_operand.vmem [shape: f32[1,128], index: 1, kind: input, shape index: {}]   ;;  %s590_s2 = inlined_call_operand.vmem [shape: f32[1,128], index: 2, kind: input, shape index: {}]   ;;  %s591_s3 = inlined_call_operand.vmem [shape: f32[128,128], index: 3, kind: input, shape index: {}]   ;;  %s592_s4 = inlined_call_operand.vmem [shape: f32[1,128], index: 4, kind: input, shape index: {}]   ;;  %s593_s5 = inlined_call_operand.vmem [shape: f32[1,128], index: 5, kind: input, shape index: {}]   ;;  %s594_s6 = inlined_call_operand.vmem [shape: f32[128,128], index: 6, kind: output, shape index: {}]  }
   0x1 LB: > { %s433_s22 = sadd.s32 4294967295, %s464_s21   ;;  %p437_p0 = scmp.ge.s32.totalorder %s464_s21, 1  ;;  %s464_s21 = sphi %s501_s21, %s16_s21  }
   0x2   : > { %p224_p1 = scmp.lt.s32.totalorder %s464_s21, 3 }
   0x4   : > { %p225_p2 = pnand %p437_p0, %p224_p1 }
   0x5   : > { %s438_s23 = sshll.u32 (!%p225_p2), %s433_s22, 3 }
   0x6   : > { %228 = sbr.rel (%p225_p2) target bundleno = 34 (0x22), region = 44  ;;  %p260_p3 = scmp.lt.s32.totalorder (!%p225_p2), %s438_s23, 15 }
   0xb   : > { %s596_s23 = smov (!%p260_p3, %s438_s23), 15  ;;  %v454_v0 = vld [vmem:[%s589_s1] ss:$0 sm:$0xff] }
   0xc   : > { %v456_v1 = vld [vmem:[%s592_s4] ss:$0 sm:$0xff]  ;;  %s515_s28 = sshll.u32 %s596_s23, 3 }
   0xd   : > { %s521_s7 = scalar_lea.vmem %s588_s0, %s515_s28  ;;  %s527_s10 = scalar_lea.vmem %s591_s3, %s515_s28  ;;  %v532_v2 = vld [vmem:[%s590_s2] ss:$0 sm:$0xff] }
   0xe   : > { %v537_v3 = vld [vmem:[%s593_s5] ss:$0 sm:$0xff]  ;;  %v278_v6 = vld [vmem:[%s521_s7 + $0x8] sm:$0xff]  ;;  %v279_v11 = vld [vmem:[%s521_s7 + $0x10] sm:$0xff]  ;;  %s562_s17 = scalar_lea.vmem %s594_s6, %s515_s28 }
   0xf   : > { %v277_v4 = vld [vmem:[%s521_s7] sm:$0xff]  ;;  %v290_v9 = vmul.f32 %v454_v0, %v278_v6  ;;  %v310_v10 = vld [vmem:[%s527_s10 + $0x8] sm:$0xff]  ;;  %v311_v12 = vld [vmem:[%s527_s10 + $0x10] sm:$0xff]  ;;  %v291_v14 = vmul.f32 %v454_v0, %v279_v11 }
  0x10   : > { %v309_v5 = vld [vmem:[%s527_s10] sm:$0xff]  ;;  %v289_v7 = vmul.f32 %v454_v0, %v277_v4  ;;  %v322_v13 = vmul.f32 %v456_v1, %v310_v10  ;;  %v323_v15 = vmul.f32 %v456_v1, %v311_v12  ;;  %v280_v16 = vld [vmem:[%s521_s7 + $0x18] sm:$0xff]  ;;  %v282_v24 = vld [vmem:[%s521_s7 + $0x28] sm:$0xff] }
  0x11   : > { %v321_v8 = vmul.f32 %v456_v1, %v309_v5  ;;  %v312_v17 = vld [vmem:[%s527_s10 + $0x18] sm:$0xff]  ;;  %v281_v18 = vld [vmem:[%s521_s7 + $0x20] sm:$0xff]  ;;  %v302_v21 = vadd.f32 %v532_v2, %v290_v9  ;;  %v292_v22 = vmul.f32 %v454_v0, %v280_v16  ;;  %v303_v26 = vadd.f32 %v532_v2, %v291_v14  ;;  %v314_v29 = vld [vmem:[%s527_s10 + $0x28] sm:$0xff] }
  0x12   : > { %v301_v19 = vadd.f32 %v532_v2, %v289_v7  ;;  %v313_v23 = vld [vmem:[%s527_s10 + $0x20] sm:$0xff]  ;;  %v334_v25 = vadd.f32 %v537_v3, %v322_v13  ;;  %v335_v27 = vadd.f32 %v537_v3, %v323_v15  ;;  %v324_v28 = vmul.f32 %v456_v1, %v312_v17  ;;  %v283_v38 = vld [vmem:[%s521_s7 + $0x30] sm:$0xff]  ;;  %v284_v44 = vld [vmem:[%s521_s7 + $0x38] sm:$0xff] }
  0x13   : > { %v333_v20 = vadd.f32 %v537_v3, %v321_v8  ;;  %v304_v31 = vadd.f32 %v532_v2, %v292_v22  ;;  %v293_v32 = vmul.f32 %v454_v0, %v281_v18  ;;  %v325_v33 = vmul.f32 %v456_v1, %v313_v23  ;;  %v315_v39 = vld [vmem:[%s527_s10 + $0x30] sm:$0xff]  ;;  %v316_v45 = vld [vmem:[%s527_s10 + $0x38] sm:$0xff] }
  0x14   : > { %v342_v34 = vadd.f32 %v334_v25, %v302_v21  ;;  %v343_v35 = vadd.f32 %v335_v27, %v303_v26  ;;  %v336_v36 = vadd.f32 %v537_v3, %v324_v28  ;;  %v294_v37 = vmul.f32 %v454_v0, %v282_v24 }
  0x15   : > { %v341_v30 = vadd.f32 %v333_v20, %v301_v19  ;;  %v305_v41 = vadd.f32 %v532_v2, %v293_v32  ;;  %v337_v42 = vadd.f32 %v537_v3, %v325_v33  ;;  %v326_v43 = vmul.f32 %v456_v1, %v314_v29 }
  0x16   : > { %v350_v46 = vmax.f32 %v342_v34, 0.0  ;;  %v351_v47 = vmax.f32 %v343_v35, 0.0  ;;  %v344_v48 = vadd.f32 %v336_v36, %v304_v31  ;;  %v306_v49 = vadd.f32 %v532_v2, %v294_v37 }
  0x17   : > { %v349_v40 = vmax.f32 %v341_v30, 0.0  ;;  %v345_v50 = vadd.f32 %v337_v42, %v305_v41  ;;  %v338_v51 = vadd.f32 %v537_v3, %v326_v43  ;;  %v295_v52 = vmul.f32 %v454_v0, %v283_v38 }
  0x18   : > { %v327_v53 = vmul.f32 %v456_v1, %v315_v39  ;;  %358 = vst [vmem:[%s562_s17 + $0x8] sm:$0xff] %v350_v46  ;;  %v352_v54 = vmax.f32 %v344_v48, 0.0  ;;  %v296_v55 = vmul.f32 %v454_v0, %v284_v44  ;;  %v328_v56 = vmul.f32 %v456_v1, %v316_v45 }
  0x19   : > { %357 = vst [vmem:[%s562_s17] sm:$0xff] %v349_v40  ;;  %v353_v57 = vmax.f32 %v345_v50, 0.0  ;;  %v346_v58 = vadd.f32 %v338_v51, %v306_v49  ;;  %v307_v59 = vadd.f32 %v532_v2, %v295_v52 }
  0x1a   : > { %359 = vst [vmem:[%s562_s17 + $0x10] sm:$0xff] %v351_v47  ;;  %v339_v60 = vadd.f32 %v537_v3, %v327_v53  ;;  %v308_v61 = vadd.f32 %v532_v2, %v296_v55  ;;  %v340_v62 = vadd.f32 %v537_v3, %v328_v56 }
  0x1b   : > { %360 = vst [vmem:[%s562_s17 + $0x18] sm:$0xff] %v352_v54  ;;  %v354_v63 = vmax.f32 %v346_v58, 0.0 }
  0x1c   : > { %361 = vst [vmem:[%s562_s17 + $0x20] sm:$0xff] %v353_v57  ;;  %v347_v4 = vadd.f32 %v339_v60, %v307_v59  ;;  %v348_v5 = vadd.f32 %v340_v62, %v308_v61 }
  0x1d   : > { %362 = vst [vmem:[%s562_s17 + $0x28] sm:$0xff] %v354_v63 }
  0x1e   : > { %v355_v0 = vmax.f32 %v347_v4, 0.0  ;;  %v356_v1 = vmax.f32 %v348_v5, 0.0 }
  0x20   : > { %363 = vst [vmem:[%s562_s17 + $0x30] sm:$0xff] %v355_v0 }
  0x21   : > { %364 = vst [vmem:[%s562_s17 + $0x38] sm:$0xff] %v356_v1 }
  0x22 PF: > { %s16_s21 = sadd.s32 1, %s464_s21  }
  0x23   : > { %p13_p4 = scmp.ge.s32.totalorder %s16_s21, 4  }
  0x25   :  { %15 = sbr.rel (!%p13_p4) target bundleno = 1 (0x1), region = 77 }

</bundles_post_ra>
